<compile_context>
chip_gen: v7x
topology: tpu7x:2x2x1
jax: 0.10.0
libtpu: 0.0.40
codegen_flags: <defaults>
</compile_context>

<pallas_src>
import functools

import jax
import jax.numpy as jnp
from jax import lax
from jax.experimental import pallas as pl
from jax.experimental.pallas import tpu as pltpu

_LANES = 128


def _pick_max_tile_rows():
    """Rows per streaming tile (per input): 8 MiB tiles on 128 MiB-VMEM parts
    (v5e/v6e), 4 MiB tiles otherwise (safe on v7x's 64 MiB VMEM)."""
    try:
        vmem_bytes = pltpu.get_tpu_info().vmem_capacity_bytes
    except Exception:
        vmem_bytes = None
    if vmem_bytes is not None and vmem_bytes >= 100 * 1024 * 1024:
        return 16384   # 8 MiB per input tile
    return 8192        # 4 MiB per input tile


def _sse_kernel(x_ref, xhat_ref, out_ref, acc_ref, *,
                valid_rows, tile_rows, mask_tail):
    """Streams (tile_rows, 128) blocks of x / x_hat, accumulating
    sum((x_hat - x)^2) lane-parallel into an (8,128) f32 scratch; one
    cross-lane reduce in the finalize branch.

    Note: when the grid has a single step, the init and finalize pl.when
    branches both fire in the same invocation — this is correct because the
    trace order is init -> accumulate -> finalize."""
    i = pl.program_id(0)

    @pl.when(i == 0)
    def _():
        acc_ref[...] = jnp.zeros_like(acc_ref)

    d = xhat_ref[...].astype(jnp.float32) - x_ref[...].astype(jnp.float32)
    dd = d * d

    if mask_tail:
        # Last grid block is partial: zero rows beyond the valid extent
        # (their VMEM contents are undefined).  Cheap VPU work; huge slack.
        row = lax.broadcasted_iota(jnp.int32, dd.shape, 0)
        dd = jnp.where(i * tile_rows + row < valid_rows, dd, 0.0)

    if tile_rows % 8 == 0:
        # Lane/sublane-parallel fold into the (8, 128) accumulator (VPU only).
        acc_ref[...] += jnp.sum(dd.reshape(-1, 8, _LANES), axis=0)
    else:
        # Small single-block case (tile_rows == full row count, not a
        # multiple of 8): one sublane reduce into the first accumulator row.
        acc_ref[0:1, :] += jnp.sum(dd, axis=0, keepdims=True)

    @pl.when(i == pl.num_programs(0) - 1)
    def _():
        out_ref[0, 0] = jnp.sum(acc_ref[...])   # single cross-lane reduce


def _sse_pallas(x2, xh2, rows, tile_rows):
    steps = pl.cdiv(rows, tile_rows)
    mask_tail = (rows % tile_rows) != 0

    kernel = functools.partial(_sse_kernel, valid_rows=rows,
                               tile_rows=tile_rows, mask_tail=mask_tail)

    slab_spec = pl.BlockSpec((tile_rows, _LANES), lambda i: (i, 0))

    buf_bytes = 2 * 2 * tile_rows * _LANES * x2.dtype.itemsize  # 2 in, 2 bufs
    vmem_limit = int(buf_bytes) + (16 << 20)

    cost = pl.CostEstimate(
        flops=3 * rows * _LANES,
        transcendentals=0,
        bytes_accessed=int(x2.size) * x2.dtype.itemsize
        + int(xh2.size) * xh2.dtype.itemsize + 4,
    )

    out = pl.pallas_call(
        kernel,
        out_shape=jax.ShapeDtypeStruct((1, 1), jnp.float32),
        grid_spec=pltpu.PrefetchScalarGridSpec(
            num_scalar_prefetch=0,
            grid=(steps,),
            in_specs=[slab_spec, slab_spec],
            out_specs=pl.BlockSpec((1, 1), lambda i: (0, 0),
                                   memory_space=pltpu.SMEM),
            scratch_shapes=[pltpu.VMEM((8, _LANES), jnp.float32)],
        ),
        compiler_params=pltpu.CompilerParams(
            dimension_semantics=("arbitrary",),
            vmem_limit_bytes=vmem_limit,
        ),
        cost_estimate=cost,
    )(x2, xh2)
    return out[0, 0]


def vae_loss(x, x_hat, mean, log_var, beta=0.1):
    """Pallas implementation of VAELoss.forward:
         MSELoss(reduction='mean')(x_hat, x) + beta * KLD(mean, log_var)."""
    assert x.shape == x_hat.shape
    assert mean.shape == log_var.shape

    n_elems = x.size
    rows = n_elems // _LANES
    tail = n_elems - rows * _LANES

    x_flat = x.reshape(-1)
    xh_flat = x_hat.reshape(-1)

    sse = jnp.float32(0.0)
    if rows > 0:
        if tail == 0:
            x2 = x_flat.reshape(rows, _LANES)          # zero-copy reshape
            xh2 = xh_flat.reshape(rows, _LANES)
        else:
            # Rare path: not 128-divisible; stream the 128-aligned prefix
            # through the kernel, fold the tiny tail in below with plain jnp.
            x2 = x_flat[: rows * _LANES].reshape(rows, _LANES)
            xh2 = xh_flat[: rows * _LANES].reshape(rows, _LANES)

        tile_rows = min(rows, _pick_max_tile_rows())
        sse = _sse_pallas(x2, xh2, rows, tile_rows)

    if tail > 0 or rows == 0:
        dt = (xh_flat[rows * _LANES:].astype(jnp.float32)
              - x_flat[rows * _LANES:].astype(jnp.float32))
        sse = sse + jnp.sum(dt * dt)

    mse = sse / jnp.float32(n_elems)

    # KLD is tiny (O(B*latent)) and XLA-fusible: compute it in the wrapper so
    # mean/log_var never occupy VMEM in the streaming kernel.
    m = mean.astype(jnp.float32)
    lv = log_var.astype(jnp.float32)
    kld = -0.5 * jnp.sum(1.0 + lv - m * m - jnp.exp(lv))

    return mse + jnp.float32(beta) * kld


def vae_loss_ref(x, x_hat, mean, log_var, beta=0.1):
    mse = jnp.mean((x_hat.astype(jnp.float32) - x.astype(jnp.float32)) ** 2)
    kld = -0.5 * jnp.sum(1.0 + log_var.astype(jnp.float32)
                         - mean.astype(jnp.float32) ** 2
                         - jnp.exp(log_var.astype(jnp.float32)))
    return mse + beta * kld


if __name__ == "__main__":
    key = jax.random.PRNGKey(0)
    k1, k2, k3, k4 = jax.random.split(key, 4)

    B, C, H, W = 2, 4, 16, 16   # NCHW, as implied by the VAE reconstruction loss
    LATENT = 32

    x = jax.random.normal(k1, (B, C, H, W), dtype=jnp.float32)
    x_hat = jax.random.normal(k2, (B, C, H, W), dtype=jnp.float32)
    mean = jax.random.normal(k3, (B, LATENT), dtype=jnp.float32)
    log_var = 0.1 * jax.random.normal(k4, (B, LATENT), dtype=jnp.float32)

    out = jax.block_until_ready(vae_loss(x, x_hat, mean, log_var, beta=0.1))
    ref = jax.block_until_ready(vae_loss_ref(x, x_hat, mean, log_var, beta=0.1))
    assert jnp.allclose(out, ref, rtol=1e-5, atol=1e-5), (out, ref)

    # Also exercise a non-128-divisible shape (prefix kernel + jnp tail path).
    xb = jax.random.normal(k1, (2, 3, 15, 15), dtype=jnp.float32)
    xbh = jax.random.normal(k2, (2, 3, 15, 15), dtype=jnp.float32)
    out2 = jax.block_until_ready(vae_loss(xb, xbh, mean, log_var, beta=0.1))
    ref2 = jax.block_until_ready(vae_loss_ref(xb, xbh, mean, log_var, beta=0.1))
    assert jnp.allclose(out2, ref2, rtol=1e-5, atol=1e-5), (out2, ref2)

    print("KERNEL_OK")
</pallas_src>

<mosaic_0001>
module attributes {stable_mosaic.version = 11 : i64} {
  func.func @_sse_kernel(%arg0: i32, %arg1: memref<16x128xf32, #tpu.memory_space<vmem>>, %arg2: memref<16x128xf32, #tpu.memory_space<vmem>>, %arg3: memref<1x1xf32, #tpu.memory_space<smem>>, %arg4: memref<8x128xf32, #tpu.memory_space<vmem>>) attributes {dimension_semantics = [#tpu.dimension_semantics<arbitrary>], iteration_bounds = array<i64: 1>, scalar_prefetch = 0 : i64, scratch_operands = 1 : i64, tpu.core_type = #tpu.core_type<tc>, window_params = [{transform_indices = @transform_0, window_bounds = array<i64: 16, 128>}, {transform_indices = @transform_1, window_bounds = array<i64: 16, 128>}, {transform_indices = @transform_2, window_bounds = array<i64: 1, 1>}]} {
    %c0_i32 = arith.constant 0 : i32
    %0 = arith.cmpi eq, %arg0, %c0_i32 : i32
    %1 = arith.extui %0 : i1 to i32
    %c0_i32_0 = arith.constant 0 : i32
    %2 = arith.cmpi ne, %1, %c0_i32_0 : i32
    scf.if %2 {
      %cst_10 = arith.constant 0.000000e+00 : f32
      %15 = vector.broadcast %cst_10 : f32 to vector<8x128xf32>
      %c0_11 = arith.constant 0 : index
      %c0_12 = arith.constant 0 : index
      %16 = vector.load %arg4[%c0_11, %c0_12] : memref<8x128xf32, #tpu.memory_space<vmem>>, vector<8x128xf32>
      tpu.vector_store %arg4[%c0_11, %c0_12], %15 {strides = array<i32>} : memref<8x128xf32, #tpu.memory_space<vmem>>, vector<8x128xf32>,
    } else {
    }
    %c0 = arith.constant 0 : index
    %c0_1 = arith.constant 0 : index
    %3 = vector.load %arg2[%c0, %c0_1] : memref<16x128xf32, #tpu.memory_space<vmem>>, vector<16x128xf32>
    %c0_2 = arith.constant 0 : index
    %c0_3 = arith.constant 0 : index
    %4 = vector.load %arg1[%c0_2, %c0_3] : memref<16x128xf32, #tpu.memory_space<vmem>>, vector<16x128xf32>
    %5 = arith.subf %3, %4 : vector<16x128xf32>
    %6 = arith.mulf %5, %5 : vector<16x128xf32>
    %c0_4 = arith.constant 0 : index
    %c0_5 = arith.constant 0 : index
    %7 = vector.load %arg4[%c0_4, %c0_5] : memref<8x128xf32, #tpu.memory_space<vmem>>, vector<8x128xf32>
    %8 = vector.shape_cast %6 : vector<16x128xf32> to vector<2x8x128xf32>
    %cst = arith.constant dense<0.000000e+00> : vector<8x128xf32>
    %9 = vector.multi_reduction <add>, %8, %cst [0] : vector<2x8x128xf32> to vector<8x128xf32>
    %10 = arith.addf %7, %9 : vector<8x128xf32>
    %c0_6 = arith.constant 0 : index
    %c0_7 = arith.constant 0 : index
    %11 = vector.load %arg4[%c0_6, %c0_7] : memref<8x128xf32, #tpu.memory_space<vmem>>, vector<8x128xf32>
    tpu.vector_store %arg4[%c0_6, %c0_7], %10 {strides = array<i32>} : memref<8x128xf32, #tpu.memory_space<vmem>>, vector<8x128xf32>,
    %c0_i32_8 = arith.constant 0 : i32
    %12 = arith.cmpi eq, %arg0, %c0_i32_8 : i32
    %13 = arith.extui %12 : i1 to i32
    %c0_i32_9 = arith.constant 0 : i32
    %14 = arith.cmpi ne, %13, %c0_i32_9 : i32
    scf.if %14 {
      %c0_10 = arith.constant 0 : index
      %c0_11 = arith.constant 0 : index
      %15 = vector.load %arg4[%c0_10, %c0_11] : memref<8x128xf32, #tpu.memory_space<vmem>>, vector<8x128xf32>
      %16 = vector.shape_cast %15 : vector<8x128xf32> to vector<1x8x128xf32>
      %cst_12 = arith.constant dense<0.000000e+00> : vector<1xf32>
      %17 = vector.multi_reduction <add>, %16, %cst_12 [1, 2] : vector<1x8x128xf32> to vector<1xf32>
      %18 = vector.shape_cast %17 : vector<1xf32> to vector<1x1x1xf32>
      %19 = vector.extract %18[0, 0, 0] : f32 from vector<1x1x1xf32>
      %c0_13 = arith.constant 0 : index
      %c0_14 = arith.constant 0 : index
      %20 = memref.load %arg3[%c0_13, %c0_14] : memref<1x1xf32, #tpu.memory_space<smem>>
      memref.store %19, %arg3[%c0_13, %c0_14] : memref<1x1xf32, #tpu.memory_space<smem>>
    } else {
    }
    return
  }
  func.func @transform_0(%arg0: i32) -> (i32, i32) {
    %c0_i32 = arith.constant 0 : i32
    %c0_i32_0 = arith.constant 0 : i32
    return %arg0, %c0_i32 : i32, i32
  }
  func.func @transform_1(%arg0: i32) -> (i32, i32) {
    %c0_i32 = arith.constant 0 : i32
    %c0_i32_0 = arith.constant 0 : i32
    return %arg0, %c0_i32 : i32, i32
  }
  func.func @transform_2(%arg0: i32) -> (i32, i32) {
    %c0_i32 = arith.constant 0 : i32
    %c0_i32_0 = arith.constant 0 : i32
    %c0_i32_1 = arith.constant 0 : i32
    return %c0_i32, %c0_i32_0 : i32, i32
  }
}

</mosaic_0001>

<bundles_post_ra>
// kernel: tpu_custom_call.1
= control target key start
LH: loop header
LB: loop body
LE: loop exit
PB: predicated region body
PF: predicated region fallthrough
CT: control target
= control target key end

     0   :  { %7 = vsyncpa [#allocation4], 0  ;;  %s210_s0 = inlined_call_operand.hbm [shape: f32[16,128], index: 0, kind: input, shape index: {}]   ;;  %s211_s1 = inlined_call_operand.hbm [shape: f32[16,128], index: 1, kind: input, shape index: {}]   ;;  %s212_s2 = inlined_call_operand.hbm [shape: f32[1,1], index: 2, kind: output, shape index: {}]  }
   0x1   :  { %8 = vsyncpa [#allocation7], 0 }
   0x2   :  { %9 = vsyncpa [#allocation5], 0  ;;  %s154_s9 = smov [#allocation3]   ;;  %s94_s13 = scalar_lea.hbm %s210_s0, 256 }
   0x3   :  { %s15_s10 = sshll.u32 %s154_s9, 4  ;;  %p95_p0 = scmp.ne.s32.totalorder %s210_s0, %s94_s13  ;;  %s16_s10 = int_to_ptr.vmem [resolvable:$true] %s15_s10 }
   0x4   :  { %p98_p1 = scmp.lt.u32.totalorder %s94_s13, %s210_s0 }
   0x6   :  { %p100_p2 = pnand %p98_p1, %p95_p0 }
   0x8   :  { %103 = shalt.err (!%p100_p2)
}
   0x9   :  { %s104_s18 = scalar_lea.vmem %s16_s10, 256  ;;  %p109_p4 = scmp.lt.s32.totalorder %s16_s10, %s16_s10 }
   0xa   :  { %p105_p3 = scmp.ne.s32.totalorder %s16_s10, %s104_s18  ;;  %p110_p5 = scmp.lt.s32.totalorder %s104_s18, %s104_s18 }
   0xc   :  { %p111_p6 = por %p110_p5, %p109_p4 }
   0xe   :  { %p112_p7 = pnand %p111_p6, %p105_p3 }
  0x10   :  { %115 = shalt.err (!%p112_p7)
}
  0x11   :  { %s155_s19 = smov 128   ;;  %s156_s20 = smov 8  }
  0x12   :  { %21 = dma.hbm_to_vmem [thread:$0]  %s210_s0, 256, %s16_s10, [#allocation4], %s155_s19, %s155_s19, %s156_s20  }
  0x13   :  { %s157_s23 = smov [#allocation6]   ;;  %s116_s27 = scalar_lea.hbm %s211_s1, 256 }
  0x14   :  { %s27_s24 = sshll.u32 %s157_s23, 4  ;;  %p117_p8 = scmp.ne.s32.totalorder %s211_s1, %s116_s27  ;;  %s28_s24 = int_to_ptr.vmem [resolvable:$true] %s27_s24 }
  0x15   :  { %p120_p9 = scmp.lt.u32.totalorder %s116_s27, %s211_s1 }
  0x17   :  { %p122_p10 = pnand %p120_p9, %p117_p8 }
  0x19   :  { %125 = shalt.err (!%p122_p10)
}
  0x1a   :  { %s126_s4 = scalar_lea.vmem %s28_s24, 256  ;;  %p131_p12 = scmp.lt.s32.totalorder %s28_s24, %s28_s24 }
  0x1b   :  { %p127_p11 = scmp.ne.s32.totalorder %s28_s24, %s126_s4  ;;  %p132_p13 = scmp.lt.s32.totalorder %s126_s4, %s126_s4 }
  0x1d   :  { %p133_p0 = por %p132_p13, %p131_p12 }
  0x1f   :  { %p134_p1 = pnand %p133_p0, %p127_p11 }
  0x21   :  { %137 = shalt.err (!%p134_p1)
}
  0x22   :  { %33 = dma.hbm_to_vmem [thread:$0]  %s211_s1, 256, %s28_s24, [#allocation7], %s155_s19, %s155_s19, %s156_s20  }
  0x23   :  { %148 = dma.done.wait [#allocation4], 256  }
  0x24   :  { %149 = vsyncadd [#allocation4], 4294967040 }
  0x25   :  { %150 = dma.done.wait [#allocation7], 256  }
  0x26   :  { %151 = vsyncadd [#allocation7], 4294967040  ;;  %v45_v0 = vld [vmem:[#allocation6] sm:$0xff]  ;;  %v46_v1 = vld [vmem:[#allocation6 + $0x8] sm:$0xff]  ;;  %s138_s8 = scalar_lea.hbm %s212_s2, 16 }
  0x27   :  { %v47_v2 = vld [vmem:[#allocation3] sm:$0xff]  ;;  %v48_v3 = vld [vmem:[#allocation3 + $0x8] sm:$0xff]  ;;  %p139_p2 = scmp.ne.s32.totalorder %s212_s2, %s138_s8  ;;  %p142_p3 = scmp.lt.u32.totalorder %s138_s8, %s212_s2 }
  0x28   :  { %v49_v4 = vsub.f32 %v45_v0, %v47_v2  ;;  %v50_v5 = vsub.f32 %v46_v1, %v48_v3 }
  0x29   :  { %p144_p4 = pnand %p142_p3, %p139_p2 }
  0x2a   :  { %v51_v6 = vmul.f32 %v49_v4, %v49_v4  ;;  %v52_v7 = vmul.f32 %v50_v5, %v50_v5 }
  0x2c   :  { %v54_v8 = vadd.f32 %v52_v7, %v51_v6 }
  0x2e   :  { %61 = vadd.xlane.f32.xlu0 %v54_v8 }
  0xbb   :  { %v62_v9 = vpop.xlane.xlu0 %61 }
  0xbc   :  { %v63_v10 = vrot.slane %v62_v9, 4 }
  0xbe   :  { %v64_v11 = vadd.f32 %v63_v10, %v62_v9 }
  0xc0   :  { %v65_v12 = vrot.slane %v64_v11, 2 }
  0xc2   :  { %v66_v13 = vadd.f32 %v65_v12, %v64_v11 }
  0xc4   :  { %v67_v14 = vrot.slane %v66_v13, 1 }
  0xc6   :  { %v68_v15 = vadd.f32 %v67_v14, %v66_v13 }
  0xc8   :  { %87 = vpush %v68_v15 }
  0xf9   :  { %s88_s1 = spop %87 }
  0xfa   :  { %71 = sst [smem:[#allocation8]] %s88_s1 }
  0xfb   :  { %147 = shalt.err (!%p144_p4)
}
  0xfc   :  { %s158_s13 = smov [#allocation8]  }
  0xfd   :  { %79 = dma.smem_to_hbm %s158_s13, 16, %s212_s2, [#allocation5]  }
  0xfe   :  { %152 = dma.done.wait [#allocation5], 16  }
  0xff   :  { %153 = vsyncadd [#allocation5], 4294967280 }
 0x100   :  { %83 = sfence }
 0x101   :  { %84 = vsyncpa [#allocation4], 1 }
 0x102   :  { %85 = vsyncpa [#allocation7], 1 }
 0x103   :  { %86 = vsyncpa [#allocation5], 1 }

</bundles_post_ra>
